<compile_context>
chip_gen: v5e
topology: v5e:2x2
jax: 0.10.0
libtpu: 0.0.40
codegen_flags: <defaults>
</compile_context>

<pallas_src>
import functools

import jax
import jax.numpy as jnp
from jax.experimental import pallas as pl
from jax.experimental.pallas import tpu as pltpu


_NEG_BIAS = -1e30          # bias of padded (fake) classes: exp(-1e30 - m) == 0.0
_PADDED_CLASSES = 128      # lane-dense classifier width (multiple of 128)


def _mlp_kernel(x_ref, w1_ref, b1_ref, w2_ref, b2_ref, w3_ref, b3_ref,
                w4_ref, b4_ref, o_ref):
    """One batch tile: 3x (Linear + ReLU) -> Linear -> log_softmax.

    x_ref / w*_ref are bf16 (MXU operands); biases, accumulation and the
    softmax epilogue are f32.
    """
    h = jnp.dot(x_ref[...], w1_ref[...], preferred_element_type=jnp.float32)
    h = jnp.maximum(h + b1_ref[...], 0.0).astype(jnp.bfloat16)

    h = jnp.dot(h, w2_ref[...], preferred_element_type=jnp.float32)
    h = jnp.maximum(h + b2_ref[...], 0.0).astype(jnp.bfloat16)

    h = jnp.dot(h, w3_ref[...], preferred_element_type=jnp.float32)
    h = jnp.maximum(h + b3_ref[...], 0.0).astype(jnp.bfloat16)

    # Classifier: columns >= n_classes have zero weights and a -1e30 bias, so
    # they contribute exp(-huge) == 0 to the softmax sum and never win the max.
    logits = jnp.dot(h, w4_ref[...], preferred_element_type=jnp.float32)
    logits = logits + b4_ref[...]

    m = jnp.max(logits, axis=-1, keepdims=True)
    shifted = logits - m
    lse = jnp.log(jnp.sum(jnp.exp(shifted), axis=-1, keepdims=True))
    o_ref[...] = (shifted - lse).astype(o_ref.dtype)


def _spec(shape, index_map, buffer_count=None):
    """BlockSpec with an optional buffer-count hint; degrades gracefully if the
    installed Pallas does not expose pipeline_mode / pl.Buffered."""
    if buffer_count is not None:
        try:
            return pl.BlockSpec(shape, index_map,
                                pipeline_mode=pl.Buffered(buffer_count))
        except (TypeError, AttributeError):
            pass
    return pl.BlockSpec(shape, index_map)


def _choose_block_b(batch, requested):
    """Pick the batch tile: as large as requested, 8-row aligned, and split
    into >=2 grid steps for big batches so v7x can use both TensorCores."""
    bb = max(1, min(requested, batch))
    if batch >= 8:
        bb = max(8, (bb // 8) * 8)                 # sublane (8) alignment
    if batch >= 512 and pl.cdiv(batch, bb) < 2:
        bb = ((batch + 1) // 2 + 7) // 8 * 8       # two steps, each >=256 rows
    return bb


@functools.partial(jax.jit,
                   static_argnames=("n_classes", "block_b", "buffer_hints"))
def _net_forward_impl(x, prepped, *, n_classes, block_b, buffer_hints):
    w1, b1, w2, b2, w3, b3, w4, b4 = prepped
    x = x.astype(jnp.bfloat16)                     # bf16 MXU operand (halves x HBM bytes)
    B, F = x.shape
    c_pad = w4.shape[1]                            # lane-dense (128) padded classes

    bb = _choose_block_b(B, block_b)
    grid = (pl.cdiv(B, bb),)

    x_bufs = 3 if buffer_hints else None           # deeper prefetch for streamed x
    w_bufs = 1 if buffer_hints else None           # grid-invariant: fetch once

    def const2d(shape):                            # weights/biases: same block every step
        return _spec(shape, lambda i: (0, 0), w_bufs)

    out = pl.pallas_call(
        _mlp_kernel,
        out_shape=jax.ShapeDtypeStruct((B, c_pad), jnp.float32),
        grid_spec=pl.GridSpec(
            grid=grid,
            in_specs=[
                _spec((bb, F), lambda i: (i, 0), x_bufs),
                const2d(w1.shape), const2d(b1.shape),
                const2d(w2.shape), const2d(b2.shape),
                const2d(w3.shape), const2d(b3.shape),
                const2d(w4.shape), const2d(b4.shape),
            ],
            out_specs=pl.BlockSpec((bb, c_pad), lambda i: (i, 0)),
        ),
        compiler_params=pltpu.CompilerParams(
            dimension_semantics=("parallel",),
            vmem_limit_bytes=64 * 1024 * 1024,     # above v5e's 16 MiB scoped default
        ),
    )(x, w1, b1, w2, b2, w3, b3, w4, b4)

    return out[:, :n_classes]


def net_forward(x, prepped_params, *, n_classes=10, block_b=512):
    """Forward pass of the MLP as a single Pallas kernel, tiled over batch.

    Tries the buffer-count-hinted pipeline first; if this JAX/Pallas build
    rejects the hints at compile time, falls back to default double-buffering
    (all other optimizations retained)."""
    try:
        return _net_forward_impl(x, prepped_params, n_classes=n_classes,
                                 block_b=block_b, buffer_hints=True)
    except Exception:
        return _net_forward_impl(x, prepped_params, n_classes=n_classes,
                                 block_b=block_b, buffer_hints=False)


def prepare_params(params, *, padded_classes=_PADDED_CLASSES):
    """Cast weights to bf16 / biases to f32 and pad the classifier to a
    lane-dense width.  Call once outside the per-step forward so the casts are
    not re-done on every call."""
    w1, b1, w2, b2, w3, b3, w4, b4 = params
    pad = padded_classes - w4.shape[1]
    w4 = jnp.pad(w4.astype(jnp.float32), ((0, 0), (0, pad)))
    b4 = jnp.pad(b4.astype(jnp.float32), ((0, 0), (0, pad)),
                 constant_values=_NEG_BIAS)
    as_w = lambda w: w.astype(jnp.bfloat16)
    as_b = lambda b: b.astype(jnp.float32)
    return (as_w(w1), as_b(b1), as_w(w2), as_b(b2),
            as_w(w3), as_b(b3), as_w(w4), as_b(b4))


def init_params(key):
    """Deterministic init mirroring torch.nn.Linear's U(-1/sqrt(fan_in), ...)."""
    dims = [(28 * 28, 64), (64, 64), (64, 64), (64, 10)]
    params = []
    keys = jax.random.split(key, 2 * len(dims))
    for idx, (fan_in, fan_out) in enumerate(dims):
        bound = 1.0 / jnp.sqrt(jnp.float32(fan_in))
        w = jax.random.uniform(keys[2 * idx], (fan_in, fan_out),
                               minval=-bound, maxval=bound, dtype=jnp.float32)
        b = jax.random.uniform(keys[2 * idx + 1], (1, fan_out),
                               minval=-bound, maxval=bound, dtype=jnp.float32)
        params.extend([w, b])
    return tuple(params)


def reference_forward(x, params):
    """Pure f32 reference matching the PyTorch module's numerics."""
    w1, b1, w2, b2, w3, b3, w4, b4 = params
    h = jax.nn.relu(x @ w1 + b1)
    h = jax.nn.relu(h @ w2 + b2)
    h = jax.nn.relu(h @ w3 + b3)
    return jax.nn.log_softmax(h @ w4 + b4, axis=1)


def reference_forward_bf16(x, params):
    """Reference with the same bf16 rounding points as the kernel (every
    matmul operand rounded to bf16; products/accumulation in f32)."""
    w1, b1, w2, b2, w3, b3, w4, b4 = params
    bf = lambda a: a.astype(jnp.bfloat16).astype(jnp.float32)
    dot = lambda a, b: jnp.dot(bf(a), bf(b),
                               preferred_element_type=jnp.float32,
                               precision=jax.lax.Precision.HIGHEST)
    h = jax.nn.relu(dot(x, w1) + b1)
    h = jax.nn.relu(dot(h, w2) + b2)
    h = jax.nn.relu(dot(h, w3) + b3)
    return jax.nn.log_softmax(dot(h, w4) + b4, axis=1)


if __name__ == "__main__":
    key = jax.random.PRNGKey(0)
    pkey, xkey, x2key = jax.random.split(key, 3)
    params = init_params(pkey)
    prepped = prepare_params(params)

    # Small batch (single grid step).
    B = 8
    x = jax.random.normal(xkey, (B, 28 * 28), dtype=jnp.float32)
    out = jax.block_until_ready(net_forward(x, prepped))
    assert out.shape == (B, 10)
    ref = reference_forward_bf16(x, params)
    assert jnp.allclose(out, ref, atol=1e-3, rtol=1e-3), \
        float(jnp.max(jnp.abs(out - ref)))
    # bf16 operands stay close to the pure-f32 module output as well.
    assert float(jnp.max(jnp.abs(out - reference_forward(x, params)))) < 0.15

    # Larger batch: multi-step "parallel" grid with a partial tail tile.
    B2 = 200
    x2 = jax.random.normal(x2key, (B2, 28 * 28), dtype=jnp.float32)
    out2 = jax.block_until_ready(net_forward(x2, prepped, block_b=64))
    assert out2.shape == (B2, 10)
    ref2 = reference_forward_bf16(x2, params)
    assert jnp.allclose(out2, ref2, atol=1e-3, rtol=1e-3), \
        float(jnp.max(jnp.abs(out2 - ref2)))

    print("KERNEL_OK")
</pallas_src>

<mosaic_0001>
module attributes {stable_mosaic.version = 11 : i64} {
  func.func @_mlp_kernel(%arg0: i32, %arg1: memref<8x784xbf16, #tpu.memory_space<vmem>>, %arg2: memref<784x64xbf16, #tpu.memory_space<vmem>>, %arg3: memref<1x64xf32, #tpu.memory_space<vmem>>, %arg4: memref<64x64xbf16, #tpu.memory_space<vmem>>, %arg5: memref<1x64xf32, #tpu.memory_space<vmem>>, %arg6: memref<64x64xbf16, #tpu.memory_space<vmem>>, %arg7: memref<1x64xf32, #tpu.memory_space<vmem>>, %arg8: memref<64x128xbf16, #tpu.memory_space<vmem>>, %arg9: memref<1x128xf32, #tpu.memory_space<vmem>>, %arg10: memref<8x128xf32, #tpu.memory_space<vmem>>) attributes {dimension_semantics = [#tpu.dimension_semantics<parallel>], iteration_bounds = array<i64: 1>, scalar_prefetch = 0 : i64, scratch_operands = 0 : i64, tpu.core_type = #tpu.core_type<tc>, window_params = [{transform_indices = @transform_0, window_bounds = array<i64: 8, 784>}, {pipeline_mode = #tpu.pipeline_mode<synchronous>, transform_indices = @transform_1, window_bounds = array<i64: 784, 64>}, {pipeline_mode = #tpu.pipeline_mode<synchronous>, transform_indices = @transform_2, window_bounds = array<i64: 1, 64>}, {pipeline_mode = #tpu.pipeline_mode<synchronous>, transform_indices = @transform_3, window_bounds = array<i64: 64, 64>}, {pipeline_mode = #tpu.pipeline_mode<synchronous>, transform_indices = @transform_4, window_bounds = array<i64: 1, 64>}, {pipeline_mode = #tpu.pipeline_mode<synchronous>, transform_indices = @transform_5, window_bounds = array<i64: 64, 64>}, {pipeline_mode = #tpu.pipeline_mode<synchronous>, transform_indices = @transform_6, window_bounds = array<i64: 1, 64>}, {pipeline_mode = #tpu.pipeline_mode<synchronous>, transform_indices = @transform_7, window_bounds = array<i64: 64, 128>}, {pipeline_mode = #tpu.pipeline_mode<synchronous>, transform_indices = @transform_8, window_bounds = array<i64: 1, 128>}, {transform_indices = @transform_9, window_bounds = array<i64: 8, 128>}]} {
    %c0 = arith.constant 0 : index
    %c0_0 = arith.constant 0 : index
    %0 = vector.load %arg1[%c0, %c0_0] : memref<8x784xbf16, #tpu.memory_space<vmem>>, vector<8x784xbf16>
    %c0_1 = arith.constant 0 : index
    %c0_2 = arith.constant 0 : index
    %1 = vector.load %arg2[%c0_1, %c0_2] : memref<784x64xbf16, #tpu.memory_space<vmem>>, vector<784x64xbf16>
    %cst = arith.constant dense<0.000000e+00> : vector<8x64xf32>
    %2 = tpu.matmul %0, %1, %cst {dimension_numbers = #tpu.dot_dimension_numbers<[1], [0], [0], [1], [0, 0, 1, 1], [], []>} : vector<8x784xbf16>, vector<784x64xbf16>, vector<8x64xf32> -> vector<8x64xf32>
    %c0_3 = arith.constant 0 : index
    %c0_4 = arith.constant 0 : index
    %3 = vector.load %arg3[%c0_3, %c0_4] : memref<1x64xf32, #tpu.memory_space<vmem>>, vector<1x64xf32>
    %4 = vector.broadcast %3 : vector<1x64xf32> to vector<8x64xf32>
    %5 = arith.addf %2, %4 : vector<8x64xf32>
    %cst_5 = arith.constant 0.000000e+00 : f32
    %6 = vector.broadcast %cst_5 : f32 to vector<8x64xf32>
    %7 = arith.maximumf %5, %6 : vector<8x64xf32>
    %8 = arith.truncf %7 : vector<8x64xf32> to vector<8x64xbf16>
    %c0_6 = arith.constant 0 : index
    %c0_7 = arith.constant 0 : index
    %9 = vector.load %arg4[%c0_6, %c0_7] : memref<64x64xbf16, #tpu.memory_space<vmem>>, vector<64x64xbf16>
    %cst_8 = arith.constant dense<0.000000e+00> : vector<8x64xf32>
    %10 = tpu.matmul %8, %9, %cst_8 {dimension_numbers = #tpu.dot_dimension_numbers<[1], [0], [0], [1], [0, 0, 1, 1], [], []>} : vector<8x64xbf16>, vector<64x64xbf16>, vector<8x64xf32> -> vector<8x64xf32>
    %c0_9 = arith.constant 0 : index
    %c0_10 = arith.constant 0 : index
    %11 = vector.load %arg5[%c0_9, %c0_10] : memref<1x64xf32, #tpu.memory_space<vmem>>, vector<1x64xf32>
    %12 = vector.broadcast %11 : vector<1x64xf32> to vector<8x64xf32>
    %13 = arith.addf %10, %12 : vector<8x64xf32>
    %cst_11 = arith.constant 0.000000e+00 : f32
    %14 = vector.broadcast %cst_11 : f32 to vector<8x64xf32>
    %15 = arith.maximumf %13, %14 : vector<8x64xf32>
    %16 = arith.truncf %15 : vector<8x64xf32> to vector<8x64xbf16>
    %c0_12 = arith.constant 0 : index
    %c0_13 = arith.constant 0 : index
    %17 = vector.load %arg6[%c0_12, %c0_13] : memref<64x64xbf16, #tpu.memory_space<vmem>>, vector<64x64xbf16>
    %cst_14 = arith.constant dense<0.000000e+00> : vector<8x64xf32>
    %18 = tpu.matmul %16, %17, %cst_14 {dimension_numbers = #tpu.dot_dimension_numbers<[1], [0], [0], [1], [0, 0, 1, 1], [], []>} : vector<8x64xbf16>, vector<64x64xbf16>, vector<8x64xf32> -> vector<8x64xf32>
    %c0_15 = arith.constant 0 : index
    %c0_16 = arith.constant 0 : index
    %19 = vector.load %arg7[%c0_15, %c0_16] : memref<1x64xf32, #tpu.memory_space<vmem>>, vector<1x64xf32>
    %20 = vector.broadcast %19 : vector<1x64xf32> to vector<8x64xf32>
    %21 = arith.addf %18, %20 : vector<8x64xf32>
    %cst_17 = arith.constant 0.000000e+00 : f32
    %22 = vector.broadcast %cst_17 : f32 to vector<8x64xf32>
    %23 = arith.maximumf %21, %22 : vector<8x64xf32>
    %24 = arith.truncf %23 : vector<8x64xf32> to vector<8x64xbf16>
    %c0_18 = arith.constant 0 : index
    %c0_19 = arith.constant 0 : index
    %25 = vector.load %arg8[%c0_18, %c0_19] : memref<64x128xbf16, #tpu.memory_space<vmem>>, vector<64x128xbf16>
    %cst_20 = arith.constant dense<0.000000e+00> : vector<8x128xf32>
    %26 = tpu.matmul %24, %25, %cst_20 {dimension_numbers = #tpu.dot_dimension_numbers<[1], [0], [0], [1], [0, 0, 1, 1], [], []>} : vector<8x64xbf16>, vector<64x128xbf16>, vector<8x128xf32> -> vector<8x128xf32>
    %c0_21 = arith.constant 0 : index
    %c0_22 = arith.constant 0 : index
    %27 = vector.load %arg9[%c0_21, %c0_22] : memref<1x128xf32, #tpu.memory_space<vmem>>, vector<1x128xf32>
    %28 = vector.broadcast %27 : vector<1x128xf32> to vector<8x128xf32>
    %29 = arith.addf %26, %28 : vector<8x128xf32>
    %cst_23 = arith.constant dense<0xFF800000> : vector<8xf32>
    %30 = vector.multi_reduction <maximumf>, %29, %cst_23 [1] : vector<8x128xf32> to vector<8xf32>
    %31 = vector.shape_cast %30 : vector<8xf32> to vector<8x1xf32>
    %32 = vector.broadcast %31 : vector<8x1xf32> to vector<8x128xf32>
    %33 = arith.subf %29, %32 : vector<8x128xf32>
    %34 = math.exp %33 : vector<8x128xf32>
    %cst_24 = arith.constant dense<0.000000e+00> : vector<8xf32>
    %35 = vector.multi_reduction <add>, %34, %cst_24 [1] : vector<8x128xf32> to vector<8xf32>
    %36 = vector.shape_cast %35 : vector<8xf32> to vector<8x1xf32>
    %37 = math.log %36 : vector<8x1xf32>
    %38 = vector.broadcast %37 : vector<8x1xf32> to vector<8x128xf32>
    %39 = arith.subf %33, %38 : vector<8x128xf32>
    %c0_25 = arith.constant 0 : index
    %c0_26 = arith.constant 0 : index
    %40 = vector.load %arg10[%c0_25, %c0_26] : memref<8x128xf32, #tpu.memory_space<vmem>>, vector<8x128xf32>
    tpu.vector_store %arg10[%c0_25, %c0_26], %39 {strides = array<i32>} : memref<8x128xf32, #tpu.memory_space<vmem>>, vector<8x128xf32>,
    return
  }
  func.func @transform_0(%arg0: i32) -> (i32, i32) {
    %c0_i32 = arith.constant 0 : i32
    %c0_i32_0 = arith.constant 0 : i32
    return %arg0, %c0_i32 : i32, i32
  }
  func.func @transform_1(%arg0: i32) -> (i32, i32) {
    %c0_i32 = arith.constant 0 : i32
    %c0_i32_0 = arith.constant 0 : i32
    %c0_i32_1 = arith.constant 0 : i32
    return %c0_i32, %c0_i32_0 : i32, i32
  }
  func.func @transform_2(%arg0: i32) -> (i32, i32) {
    %c0_i32 = arith.constant 0 : i32
    %c0_i32_0 = arith.constant 0 : i32
    %c0_i32_1 = arith.constant 0 : i32
    return %c0_i32, %c0_i32_0 : i32, i32
  }
  func.func @transform_3(%arg0: i32) -> (i32, i32) {
    %c0_i32 = arith.constant 0 : i32
    %c0_i32_0 = arith.constant 0 : i32
    %c0_i32_1 = arith.constant 0 : i32
    return %c0_i32, %c0_i32_0 : i32, i32
  }
  func.func @transform_4(%arg0: i32) -> (i32, i32) {
    %c0_i32 = arith.constant 0 : i32
    %c0_i32_0 = arith.constant 0 : i32
    %c0_i32_1 = arith.constant 0 : i32
    return %c0_i32, %c0_i32_0 : i32, i32
  }
  func.func @transform_5(%arg0: i32) -> (i32, i32) {
    %c0_i32 = arith.constant 0 : i32
    %c0_i32_0 = arith.constant 0 : i32
    %c0_i32_1 = arith.constant 0 : i32
    return %c0_i32, %c0_i32_0 : i32, i32
  }
  func.func @transform_6(%arg0: i32) -> (i32, i32) {
    %c0_i32 = arith.constant 0 : i32
    %c0_i32_0 = arith.constant 0 : i32
    %c0_i32_1 = arith.constant 0 : i32
    return %c0_i32, %c0_i32_0 : i32, i32
  }
  func.func @transform_7(%arg0: i32) -> (i32, i32) {
    %c0_i32 = arith.constant 0 : i32
    %c0_i32_0 = arith.constant 0 : i32
    %c0_i32_1 = arith.constant 0 : i32
    return %c0_i32, %c0_i32_0 : i32, i32
  }
  func.func @transform_8(%arg0: i32) -> (i32, i32) {
    %c0_i32 = arith.constant 0 : i32
    %c0_i32_0 = arith.constant 0 : i32
    %c0_i32_1 = arith.constant 0 : i32
    return %c0_i32, %c0_i32_0 : i32, i32
  }
  func.func @transform_9(%arg0: i32) -> (i32, i32) {
    %c0_i32 = arith.constant 0 : i32
    %c0_i32_0 = arith.constant 0 : i32
    return %arg0, %c0_i32 : i32, i32
  }
}

</mosaic_0001>

<bundles_post_ra>
// kernel: _net_forward_impl.1
= control target key start
LH: loop header
LB: loop body
LE: loop exit
PB: predicated region body
PF: predicated region fallthrough
CT: control target
= control target key end

     0   :  { %s1351_s0 = inlined_call_operand.vmem [shape: bf16[8,784], index: 0, kind: input, shape index: {}]   ;;  %s1352_s1 = inlined_call_operand.vmem [shape: bf16[784,64], index: 1, kind: input, shape index: {}]   ;;  %s1353_s2 = inlined_call_operand.vmem [shape: f32[1,64], index: 2, kind: input, shape index: {}]   ;;  %s1354_s3 = inlined_call_operand.vmem [shape: bf16[64,64], index: 3, kind: input, shape index: {}]   ;;  %s1355_s4 = inlined_call_operand.vmem [shape: f32[1,64], index: 4, kind: input, shape index: {}]   ;;  %s1356_s5 = inlined_call_operand.vmem [shape: bf16[64,64], index: 5, kind: input, shape index: {}]   ;;  %s1357_s6 = inlined_call_operand.vmem [shape: f32[1,64], index: 6, kind: input, shape index: {}]   ;;  %s1358_s7 = inlined_call_operand.vmem [shape: bf16[64,128], index: 7, kind: input, shape index: {}]   ;;  %s1359_s8 = inlined_call_operand.vmem [shape: f32[1,128], index: 8, kind: input, shape index: {}]   ;;  %s1360_s9 = inlined_call_operand.hbm [shape: f32[8,128], index: 9, kind: output, shape index: {}]  }
   0x1   :  { %v998_v0 = vld [vmem:[%s1352_s1 + $0x38] sm:$0xff]  ;;  %v997_v3 = vld [vmem:[%s1352_s1 + $0x30] sm:$0xff]  ;;  %v996_v8 = vld [vmem:[%s1352_s1 + $0x28] sm:$0xff] }
   0x2   :  { %v1006_v1 = vld [vmem:[%s1352_s1 + $0x78] sm:$0xff]  ;;  %462 = vmatpush.bf16.msra.mxu0 %v998_v0  ;;  %v1005_v4 = vld [vmem:[%s1352_s1 + $0x70] sm:$0xff]  ;;  %v1004_v9 = vld [vmem:[%s1352_s1 + $0x68] sm:$0xff] }
   0x3   :  { %v1014_v2 = vld [vmem:[%s1352_s1 + $0xb8] sm:$0xff]  ;;  %475 = vmatpush.bf16.msra.mxu1 %v1006_v1  ;;  %v1013_v5 = vld [vmem:[%s1352_s1 + $0xb0] sm:$0xff]  ;;  %v1012_v10 = vld [vmem:[%s1352_s1 + $0xa8] sm:$0xff] }
   0x4   :  { %488 = vmatpush.bf16.msra.mxu2 %v1014_v2  ;;  %v1022_v6 = vld [vmem:[%s1352_s1 + $0xf8] sm:$0xff]  ;;  %v1021_v7 = vld [vmem:[%s1352_s1 + $0xf0] sm:$0xff]  ;;  %v1020_v11 = vld [vmem:[%s1352_s1 + $0xe8] sm:$0xff] }
   0x5   :  { %501 = vmatpush.bf16.msra.mxu3 %v1022_v6  ;;  %v995_v12 = vld [vmem:[%s1352_s1 + $0x20] sm:$0xff]  ;;  %v994_v16 = vld [vmem:[%s1352_s1 + $0x18] sm:$0xff] }
   0x6   :  { %463 = vmatpush.bf16.msra.mxu0 %v997_v3  ;;  %v1003_v13 = vld [vmem:[%s1352_s1 + $0x60] sm:$0xff]  ;;  %v1002_v17 = vld [vmem:[%s1352_s1 + $0x58] sm:$0xff] }
   0x7   :  { %476 = vmatpush.bf16.msra.mxu1 %v1005_v4  ;;  %v1011_v14 = vld [vmem:[%s1352_s1 + $0xa0] sm:$0xff]  ;;  %v1010_v18 = vld [vmem:[%s1352_s1 + $0x98] sm:$0xff] }
   0x8   :  { %489 = vmatpush.bf16.msra.mxu2 %v1013_v5  ;;  %v1019_v15 = vld [vmem:[%s1352_s1 + $0xe0] sm:$0xff]  ;;  %v1018_v19 = vld [vmem:[%s1352_s1 + $0xd8] sm:$0xff] }
   0x9   :  { %502 = vmatpush.bf16.msra.mxu3 %v1021_v7 }
   0xa   :  { %464 = vmatpush.bf16.msra.mxu0 %v996_v8 }
   0xb   :  { %477 = vmatpush.bf16.msra.mxu1 %v1004_v9 }
   0xc   :  { %490 = vmatpush.bf16.msra.mxu2 %v1012_v10 }
   0xd   :  { %503 = vmatpush.bf16.msra.mxu3 %v1020_v11 }
   0xe   :  { %465 = vmatpush.bf16.msra.mxu0 %v995_v12 }
   0xf   :  { %478 = vmatpush.bf16.msra.mxu1 %v1003_v13 }
  0x10   :  { %491 = vmatpush.bf16.msra.mxu2 %v1011_v14 }
  0x11   :  { %504 = vmatpush.bf16.msra.mxu3 %v1019_v15 }
  0x12   :  { %14 = vsyncpa [#allocation3], 0  ;;  %466 = vmatpush.bf16.msra.mxu0 %v994_v16  ;;  %v993_v20 = vld [vmem:[%s1352_s1 + $0x10] sm:$0xff]  ;;  %v992_v24 = vld [vmem:[%s1352_s1 + $0x8] sm:$0xff]  ;;  %vm458_vm0 = vcmask 130048   ;;  %vm591_vm1 = vcmask 523264  }
  0x13   :  { %479 = vmatpush.bf16.msra.mxu1 %v1002_v17  ;;  %v1001_v21 = vld [vmem:[%s1352_s1 + $0x50] sm:$0xff]  ;;  %v1000_v25 = vld [vmem:[%s1352_s1 + $0x48] sm:$0xff]  ;;  %v34_v26 = vld [vmem:[%s1351_s0] sm:$0xff]  ;;  %s734_s15 = sshll.u32 %s1360_s9, 4  ;;  %s735_s15 = int_to_ptr.hbm [resolvable:$true] %s734_s15 }
  0x14   :  { %492 = vmatpush.bf16.msra.mxu2 %v1010_v18  ;;  %v1009_v22 = vld [vmem:[%s1352_s1 + $0x90] sm:$0xff]  ;;  %v1008_v27 = vld [vmem:[%s1352_s1 + $0x88] sm:$0xff]  ;;  %v144_v29 = vunpack.c.l.b16 %v34_v26  ;;  %v145_v31 = vunpack.c.h.b16 %v34_v26  ;;  %v991_v32 = vld [vmem:[%s1352_s1] sm:$0xff] }
  0x15   :  { %505 = vmatpush.bf16.msra.mxu3 %v1018_v19  ;;  %v1017_v23 = vld [vmem:[%s1352_s1 + $0xd0] sm:$0xff]  ;;  %v35_v28 = vld [vmem:[%s1351_s0 + $0x8] sm:$0xff]  ;;  %v999_v33 = vld [vmem:[%s1352_s1 + $0x40] sm:$0xff] }
  0x16   :  { %467 = vmatpush.bf16.msra.mxu0 %v993_v20  ;;  %v1016_v30 = vld [vmem:[%s1352_s1 + $0xc8] sm:$0xff]  ;;  %v1030_v34 = vld [vmem:[%s1352_s1 + $0x138] sm:$0xff]  ;;  %v1007_v36 = vld [vmem:[%s1352_s1 + $0x80] sm:$0xff]  ;;  %v146_v37 = vunpack.c.l.b16 %v35_v28  ;;  %v151_v38 = vpack.c.b16 %v144_v29, %v144_v29  ;;  %v152_v39 = vpack.c.b16 %v145_v31, %v145_v31  ;;  %v147_v40 = vunpack.c.h.b16 %v35_v28 }
  0x17   :  { %480 = vmatpush.bf16.msra.mxu1 %v1001_v21  ;;  %v1038_v35 = vld [vmem:[%s1352_s1 + $0x178] sm:$0xff]  ;;  %v1015_v41 = vld [vmem:[%s1352_s1 + $0xc0] sm:$0xff]  ;;  %v1029_v43 = vld [vmem:[%s1352_s1 + $0x130] sm:$0xff] }
  0x18   :  { %493 = vmatpush.bf16.msra.mxu2 %v1009_v22  ;;  %v1039_v42 = vld [vmem:[%s1352_s1 + $0x180] sm:$0xff]  ;;  %v1037_v44 = vld [vmem:[%s1352_s1 + $0x170] sm:$0xff]  ;;  %v153_v45 = vpack.c.b16 %v146_v37, %v146_v37  ;;  %v154_v46 = vpack.c.b16 %v147_v40, %v147_v40  ;;  %v1028_v47 = vld [vmem:[%s1352_s1 + $0x128] sm:$0xff] }
  0x19   :  { %506 = vmatpush.bf16.msra.mxu3 %v1017_v23  ;;  %v1036_v48 = vld [vmem:[%s1352_s1 + $0x168] sm:$0xff]  ;;  %v1027_v49 = vld [vmem:[%s1352_s1 + $0x120] sm:$0xff]  ;;  %v37_v51 = vld [vmem:[%s1351_s0 + $0x18] sm:$0xf] }
  0x1a   :  { %468 = vmatpush.bf16.msra.mxu0 %v992_v24  ;;  %v1035_v50 = vld [vmem:[%s1352_s1 + $0x160] sm:$0xff]  ;;  %v1026_v52 = vld [vmem:[%s1352_s1 + $0x118] sm:$0xff]  ;;  %v150_v54 = vunpack.c.l.b16 %v37_v51  ;;  %v1025_v55 = vld [vmem:[%s1352_s1 + $0x110] sm:$0xff] }
  0x1b   :  { %481 = vmatpush.bf16.msra.mxu1 %v1000_v25  ;;  %v1034_v53 = vld [vmem:[%s1352_s1 + $0x158] sm:$0xff]  ;;  %v1033_v56 = vld [vmem:[%s1352_s1 + $0x150] sm:$0xff]  ;;  %v1024_v58 = vld [vmem:[%s1352_s1 + $0x108] sm:$0xff] }
  0x1c   :  { %494 = vmatpush.bf16.msra.mxu2 %v1008_v27  ;;  %v157_v57 = vpack.c.b16 %v150_v54, %v150_v54  ;;  %v1032_v59 = vld [vmem:[%s1352_s1 + $0x148] sm:$0xff]  ;;  %v36_v60 = vld [vmem:[%s1351_s0 + $0x10] sm:$0xff]  ;;  %v1023_v63 = vld [vmem:[%s1352_s1 + $0x100] sm:$0xff] }
  0x1d   :  { %507 = vmatpush.bf16.msra.mxu3 %v1016_v30  ;;  %v148_v61 = vunpack.c.l.b16 %v36_v60  ;;  %v149_v62 = vunpack.c.h.b16 %v36_v60  ;;  %v1031_v0 = vld [vmem:[%s1352_s1 + $0x140] sm:$0xff]  ;;  %v1043_v3 = vld [vmem:[%s1354_s3 + $0x18] sm:$0xff]  ;;  %v1042_v4 = vld [vmem:[%s1354_s3 + $0x10] sm:$0xff] }
  0x1e   :  { %469 = vmatpush.bf16.msra.mxu0 %v991_v32  ;;  %v1041_v5 = vld [vmem:[%s1354_s3 + $0x8] sm:$0xff]  ;;  %v1040_v8 = vld [vmem:[%s1354_s3] sm:$0xff]  ;;  %v1047_v11 = vld [vmem:[%s1356_s5 + $0x18] sm:$0xff] }
  0x1f   :  { %482 = vmatpush.bf16.msra.mxu1 %v999_v33  ;;  %v155_v1 = vpack.c.b16 %v148_v61, %v148_v61  ;;  %v156_v2 = vpack.c.b16 %v149_v62, %v149_v62  ;;  %v1046_v14 = vld [vmem:[%s1356_s5 + $0x10] sm:$0xff]  ;;  %v1053_v15 = vld [vmem:[%s1353_s2] ss:$0 sm:$0xff]  ;;  %v1045_v16 = vld [vmem:[%s1356_s5 + $0x8] sm:$0xff] }
  0x20   :  { %495 = vmatpush.bf16.msra.mxu2 %v1007_v36  ;;  %v1050_v36 = vld [vmem:[%s1358_s7 + $0x10] sm:$0xff]  ;;  %v1049_v37 = vld [vmem:[%s1358_s7 + $0x8] sm:$0xff]  ;;  %v1056_v51 = vld [vmem:[%s1359_s8] ss:$0 sm:$0xff] }
  0x21   :  { %470 = vmatmul.bf16.vlgmr.msra.gmra.mxu0 %v151_v38  ;;  %508 = vmatpush.bf16.msra.mxu3 %v1015_v41  ;;  %v1054_v38 = vld [vmem:[%s1355_s4] ss:$0 sm:$0xff] }
  0x22   :  { %514 = vmatpush.bf16.msrb.mxu0 %v1030_v34  ;;  %483 = vmatmul.bf16.vlgmr.msra.gmra.mxu1 %v152_v39  ;;  %v1044_v34 = vld [vmem:[%s1356_s5] sm:$0xff] }
  0x23   :  { %527 = vmatpush.bf16.msrb.mxu1 %v1038_v35  ;;  %496 = vmatmul.bf16.vlgmr.msra.gmra.mxu2 %v153_v45  ;;  %v1051_v35 = vld [vmem:[%s1358_s7 + $0x18] sm:$0xff]  ;;  %v1055_v45 = vld [vmem:[%s1357_s6] ss:$0 sm:$0xff]  ;;  %s1087_s6 = smov [#allocation2]  }
  0x24   :  { %547 = vmatpush.bf16.msrb.mxu2 %v1039_v42  ;;  %509 = vmatmul.bf16.vlgmr.msra.gmra.mxu3 %v154_v46 }
  0x25   :  { %599 = vmatpush.bf16.msrb.mxu3 %v1043_v3 }
  0x26   :  { %515 = vmatpush.bf16.msrb.mxu0 %v1029_v43 }
  0x27   :  { %528 = vmatpush.bf16.msrb.mxu1 %v1037_v44  ;;  %v1048_v44 = vld [vmem:[%s1358_s7] sm:$0xff]  ;;  %s732_s7 = sshll.u32 %s1087_s6, 4  ;;  %s733_s7 = int_to_ptr.vmem [resolvable:$true] %s732_s7 }
  0x28   :  { %653 = vmatpush.bf16.msra.mxu2 %v1047_v11 }
  0x29   :  { %600 = vmatpush.bf16.msrb.mxu3 %v1042_v4 }
  0x2a   :  { %516 = vmatpush.bf16.msrb.mxu0 %v1028_v47 }
  0x2b   :  { %529 = vmatpush.bf16.msrb.mxu1 %v1036_v48 }
  0x2c   :  { %654 = vmatpush.bf16.msra.mxu2 %v1046_v14 }
  0x2d   :  { %601 = vmatpush.bf16.msrb.mxu3 %v1041_v5 }
  0x2e   :  { %517 = vmatpush.bf16.msrb.mxu0 %v1027_v49 }
  0x2f   :  { %530 = vmatpush.bf16.msrb.mxu1 %v1035_v50 }
  0x30   :  { %655 = vmatpush.bf16.msra.mxu2 %v1045_v16 }
  0x31   :  { %602 = vmatpush.bf16.msrb.mxu3 %v1040_v8 }
  0x32   :  { %518 = vmatpush.bf16.msrb.mxu0 %v1026_v52 }
  0x33   :  { %531 = vmatpush.bf16.msrb.mxu1 %v1034_v53  ;;  %939 = vmatmul.msk.bf16.vlgmr.msrb.gmra.mxu2 %vm458_vm0, %v157_v57 }
  0x34   :  { %656 = vmatpush.bf16.msra.mxu2 %v1044_v34 }
  0x35   :  { %707 = vmatpush.bf16.msra.mxu3 %v1051_v35 }
  0x36   :  { %519 = vmatpush.bf16.msrb.mxu0 %v1025_v55 }
  0x37   :  { %532 = vmatpush.bf16.msrb.mxu1 %v1033_v56 }
  0x39   :  { %708 = vmatpush.bf16.msra.mxu3 %v1050_v36 }
  0x3a   :  { %520 = vmatpush.bf16.msrb.mxu0 %v1024_v58 }
  0x3b   :  { %533 = vmatpush.bf16.msrb.mxu1 %v1032_v59 }
  0x3d   :  { %709 = vmatpush.bf16.msra.mxu3 %v1049_v37 }
  0x3e   :  { %521 = vmatpush.bf16.msrb.mxu0 %v1023_v63 }
  0x3f   :  { %534 = vmatpush.bf16.msrb.mxu1 %v1031_v0 }
  0x41   :  { %522 = vmatmul.bf16.vlgmr.msrb.gmra.mxu0 %v155_v1  ;;  %710 = vmatpush.bf16.msra.mxu3 %v1048_v44 }
  0x42   :  { %535 = vmatmul.bf16.vlgmr.msrb.gmra.mxu1 %v156_v2 }
  0x9e   :  { %v471_v6 = vpop.f32.mrf.mxu0 }
  0x9f   :  { %v484_v7 = vpop.f32.mrf.mxu1  ;;  %v472_v17 = vadd.f32 %v1053_v15, %v471_v6 }
  0xa1   :  { %v485_v20 = vadd.f32 %v484_v7, %v472_v17 }
  0xa6   :  { %v473_v9 = vpop.f32.mrf.mxu0  ;;  %v497_v12 = vpop.f32.mrf.mxu2 }
  0xa7   :  { %v486_v10 = vpop.f32.mrf.mxu1  ;;  %v510_v13 = vpop.f32.mrf.mxu3  ;;  %v498_v21 = vadd.f32 %v497_v12, %v485_v20 }
  0xa9   :  { %v511_v23 = vadd.f32 %v510_v13, %v498_v21 }
  0xae   :  { %v499_v18 = vpop.f32.mrf.mxu2 }
  0xaf   :  { %v512_v19 = vpop.f32.mrf.mxu3 }
  0xb6   :  { %v549_v22 = vpop.f32.mrf.mxu2 }
  0xbe   :  { %v523_v24 = vpop.f32.mrf.mxu0  ;;  %v551_v28 = vpop.f32.mrf.mxu2 }
  0xbf   :  { %v536_v25 = vpop.f32.mrf.mxu1  ;;  %v524_v26 = vadd.f32 %v523_v24, %v511_v23 }
  0xc1   :  { %v537_v27 = vadd.f32 %v536_v25, %v524_v26 }
  0xc3   :  { %v550_v29 = vadd.f32 %v549_v22, %v537_v27 }
  0xc5   :  { %v553_v30 = vmax.f32 %v550_v29, 0.0 }
  0xc6   :  { %v525_v31 = vpop.f32.mrf.mxu0 }
  0xc7   :  { %v538_v32 = vpop.f32.mrf.mxu1  ;;  %v554_v33 = vpack.c.bf16 %v553_v30, %v553_v30 }
  0xc9   :  { %956 = vmatmul.msk.bf16.vlgmr.msrb.gmra.mxu3 %vm591_vm1, %v554_v33 }
 0x14c   :  { %v604_v39 = vpop.f32.mrf.mxu3 }
 0x14d   :  { %v605_v40 = vadd.f32 %v1054_v38, %v604_v39 }
 0x14f   :  { %v608_v41 = vmax.f32 %v605_v40, 0.0 }
 0x151   :  { %v609_v42 = vpack.c.bf16 %v608_v41, %v608_v41 }
 0x153   :  { %973 = vmatmul.msk.bf16.vlgmr.msra.gmra.mxu2 %vm591_vm1, %v609_v42 }
 0x154   :  { %v606_v43 = vpop.f32.mrf.mxu3 }
 0x1d6   :  { %v658_v46 = vpop.f32.mrf.mxu2 }
 0x1d7   :  { %v659_v47 = vadd.f32 %v1055_v45, %v658_v46 }
 0x1d9   :  { %v662_v48 = vmax.f32 %v659_v47, 0.0 }
 0x1db   :  { %v663_v49 = vpack.c.bf16 %v662_v48, %v662_v48 }
 0x1dd   :  { %990 = vmatmul.msk.bf16.vlgmr.msra.gmra.mxu3 %vm591_vm1, %v663_v49 }
 0x1de   :  { %v660_v50 = vpop.f32.mrf.mxu2 }
 0x260   :  { %v712_v52 = vpop.f32.mrf.mxu3 }
 0x261   :  { %v713_v53 = vadd.f32 %v1056_v51, %v712_v52 }
 0x263   :  { %716 = vmax.xlane.f32.xlu0 %v713_v53 }
 0x268   :  { %v714_v54 = vpop.f32.mrf.mxu3 }
 0x2d6   :  { %v717_v55 = vpop.xlane.xlu0 %716 }
 0x2d7   :  { %v718_v56 = vsub.f32 %v713_v53, %v717_v55 }
 0x2d9   :  { %v719_v57 = vmul.f32 1.442695, %v718_v56 }
 0x2db   :  { %1057 = vpow2.f32 %v719_v57 }
 0x2e1   :  { %v1058_v58 = vpop.eup %1057 }
 0x2e2   :  { %721 = vadd.xlane.f32.xlu0 %v1058_v58 }
 0x355   :  { %v722_v59 = vpop.xlane.xlu0 %721 }
 0x356   :  { %1059 = vlog2.f32 %v722_v59 }
 0x35c   :  { %v1060_v60 = vpop.eup %1059 }
 0x35d   :  { %v724_v61 = vmul.f32 0.6931472, %v1060_v60 }
 0x35f   :  { %v725_v62 = vsub.f32 %v718_v56, %v724_v61 }
 0x361   :  { %726 = vst [vmem:[#allocation2] sm:$0xff] %v725_v62 }
 0x362   :  { %737 = dma.vmem_to_hbm [thread:$0]  %s733_s7, 128, %s735_s15, [#allocation3]  }
 0x363   :  { %1085 = dma.done.wait [#allocation3], 128  }
 0x364   :  { %1086 = vsyncadd [#allocation3], 4294967168 }
 0x365   :  { %742 = vsyncpa [#allocation3], 1 }

</bundles_post_ra>
